<compile_context>
chip_gen: v5e
topology: v5e:2x2
jax: 0.10.0
libtpu: 0.0.40
codegen_flags: <defaults>
</compile_context>

<pallas_src>
import jax
import jax.numpy as jnp
from jax.experimental import pallas as pl
from jax.experimental.pallas import tpu as pltpu


def argext_kernel(h_ref, w_ref, b_ref, m_ref, o_ref):
    # h_ref: [TR, H]  hidden-state row tile (native dtype, f32 or bf16)
    # w_ref: [H, 2]   fc weight (in x out), resident across the grid
    # b_ref: [1, 2]   fc bias (f32), resident across the grid
    # m_ref: [TR, 1]  token_type_ids tile (int32)
    # o_ref: [TR, 2]  output tile = sigmoid(h @ w + b) * mask
    logits = jnp.dot(h_ref[...], w_ref[...],
                     preferred_element_type=jnp.float32) + b_ref[...]
    mask = m_ref[...].astype(jnp.float32)
    o_ref[...] = (jax.nn.sigmoid(logits) * mask).astype(o_ref.dtype)


def argument_extraction_pallas(hidden_state, token_type_ids, fc_w, fc_b,
                               *, row_tile=512):
    """hidden_state: [B, S, H] (f32 or bf16); token_type_ids: [B, S] int32;
    fc_w: [2, H] (PyTorch nn.Linear layout); fc_b: [2].

    Returns [B, S, 2] f32 = sigmoid(hidden @ fc_w.T + fc_b) * token_type_ids.
    """
    B, S, H = hidden_state.shape
    R = B * S
    dt = hidden_state.dtype

    # No dtype copy of the big tensor -- reshape only, keep native dtype.
    h2d = hidden_state.reshape(R, H)
    # Tiny params: cast weight to the hidden dtype so the MXU sees one dtype,
    # keep the bias in f32 (added to the f32 accumulator).
    w = jnp.transpose(fc_w).astype(dt)                  # [H, 2]
    b2 = fc_b.reshape(1, 2).astype(jnp.float32)         # [1, 2]
    m2d = token_type_ids.reshape(R, 1).astype(jnp.int32)  # [R, 1] int32

    # Row tile: multiple of 8 (sublane), capped at R. ~512-2048 rows keeps the
    # per-buffer tile small enough for v7x's 64 MiB VMEM while amortizing the
    # ~0.35 us per-grid-step overhead.
    tr = min(row_tile, R)
    if tr != R:
        tr = max(8, (tr // 8) * 8)
    grid = (pl.cdiv(R, tr),)

    out = pl.pallas_call(
        argext_kernel,
        out_shape=jax.ShapeDtypeStruct((R, 2), jnp.float32),
        grid=grid,
        in_specs=[
            pl.BlockSpec((tr, H), lambda i: (i, 0)),   # streamed hidden rows
            pl.BlockSpec((H, 2), lambda i: (0, 0)),    # resident weight
            pl.BlockSpec((1, 2), lambda i: (0, 0)),    # resident bias
            pl.BlockSpec((tr, 1), lambda i: (i, 0)),   # streamed int32 mask
        ],
        out_specs=pl.BlockSpec((tr, 2), lambda i: (i, 0)),
        compiler_params=pltpu.CompilerParams(
            dimension_semantics=("parallel",)),
    )(h2d, w, b2, m2d)
    return out.reshape(B, S, 2)


def synthetic_encoder(input_ids, token_type_ids, attn_masks, params,
                      dtype=jnp.float32):
    """Deterministic stand-in for the external encoder: returns [B, S, H]."""
    tok_emb = params["tok_emb"][input_ids]                 # [B, S, H]
    type_emb = params["type_emb"][token_type_ids]          # [B, S, H]
    B, S, _ = tok_emb.shape
    pos_emb = params["pos_emb"][:S][None, :, :]            # [1, S, H]
    h = jnp.tanh(tok_emb + type_emb + pos_emb)
    h = h * attn_masks[..., None].astype(h.dtype)
    return h.astype(dtype)


def _reference(hidden_state, token_type_ids, fc_w, fc_b):
    h = hidden_state.astype(jnp.float32)
    logits = h @ fc_w.astype(jnp.float32).T + fc_b.astype(jnp.float32)
    return jax.nn.sigmoid(logits) * token_type_ids[..., None].astype(jnp.float32)


if __name__ == "__main__":
    key = jax.random.PRNGKey(0)
    k_tok, k_type, k_pos, k_w, k_b, k_ids, k_ids2 = jax.random.split(key, 7)

    # ---- primary small demo: B=2, S=8, H=32, f32 hidden state -------------
    B, S, H, VOCAB = 2, 8, 32, 100
    params = {
        "tok_emb": jax.random.normal(k_tok, (VOCAB, H), jnp.float32) * 0.1,
        "type_emb": jax.random.normal(k_type, (2, H), jnp.float32) * 0.1,
        "pos_emb": jax.random.normal(k_pos, (S, H), jnp.float32) * 0.1,
    }
    fc_w = jax.random.normal(k_w, (2, H), jnp.float32) * 0.1   # nn.Linear weight
    fc_b = jax.random.normal(k_b, (2,), jnp.float32) * 0.1     # nn.Linear bias

    input_ids = jax.random.randint(k_ids, (B, S), 0, VOCAB, dtype=jnp.int32)
    token_type_ids = jnp.concatenate(
        [jnp.zeros((B, S // 2), jnp.int32), jnp.ones((B, S - S // 2), jnp.int32)],
        axis=1)
    attn_masks = jnp.ones((B, S), jnp.int32)

    hidden_state = synthetic_encoder(input_ids, token_type_ids, attn_masks, params)
    logits = argument_extraction_pallas(hidden_state, token_type_ids, fc_w, fc_b)
    logits = jax.block_until_ready(logits)

    ref = _reference(hidden_state, token_type_ids, fc_w, fc_b)
    assert logits.shape == (B, S, 2)
    assert jnp.allclose(logits, ref, atol=1e-5, rtol=1e-5)

    # ---- secondary check: tiled (multi-step, partial last block) + bf16 ----
    B2, S2, H2 = 2, 200, 128          # R = 400 rows, row_tile=128 -> grid=(4,)
    params2 = {
        "tok_emb": jax.random.normal(k_tok, (VOCAB, H2), jnp.float32) * 0.1,
        "type_emb": jax.random.normal(k_type, (2, H2), jnp.float32) * 0.1,
        "pos_emb": jax.random.normal(k_pos, (S2, H2), jnp.float32) * 0.1,
    }
    fc_w2 = jax.random.normal(k_w, (2, H2), jnp.float32) * 0.1
    fc_b2 = jax.random.normal(k_b, (2,), jnp.float32) * 0.1
    input_ids2 = jax.random.randint(k_ids2, (B2, S2), 0, VOCAB, dtype=jnp.int32)
    token_type_ids2 = jnp.concatenate(
        [jnp.zeros((B2, S2 // 2), jnp.int32),
         jnp.ones((B2, S2 - S2 // 2), jnp.int32)], axis=1)
    attn_masks2 = jnp.ones((B2, S2), jnp.int32)

    # bf16 hidden state is passed straight through (no f32 upcast in wrapper)
    hidden_bf16 = synthetic_encoder(input_ids2, token_type_ids2, attn_masks2,
                                    params2, dtype=jnp.bfloat16)
    logits2 = argument_extraction_pallas(hidden_bf16, token_type_ids2,
                                         fc_w2, fc_b2, row_tile=128)
    logits2 = jax.block_until_ready(logits2)

    ref2 = _reference(hidden_bf16, token_type_ids2, fc_w2, fc_b2)
    assert logits2.shape == (B2, S2, 2)
    assert jnp.allclose(logits2, ref2, atol=5e-2, rtol=5e-2)

    print("KERNEL_OK")
</pallas_src>

<mosaic_0001>
module attributes {stable_mosaic.version = 11 : i64} {
  func.func @argext_kernel(%arg0: i32, %arg1: memref<16x32xf32, #tpu.memory_space<vmem>>, %arg2: memref<32x2xf32, #tpu.memory_space<vmem>>, %arg3: memref<1x2xf32, #tpu.memory_space<vmem>>, %arg4: memref<16x1xi32, #tpu.memory_space<vmem>>, %arg5: memref<16x2xf32, #tpu.memory_space<vmem>>) attributes {dimension_semantics = [#tpu.dimension_semantics<parallel>], iteration_bounds = array<i64: 1>, scalar_prefetch = 0 : i64, scratch_operands = 0 : i64, tpu.core_type = #tpu.core_type<tc>, window_params = [{transform_indices = @transform_0, window_bounds = array<i64: 16, 32>}, {pipeline_mode = #tpu.pipeline_mode<synchronous>, transform_indices = @transform_1, window_bounds = array<i64: 32, 2>}, {pipeline_mode = #tpu.pipeline_mode<synchronous>, transform_indices = @transform_2, window_bounds = array<i64: 1, 2>}, {transform_indices = @transform_3, window_bounds = array<i64: 16, 1>}, {transform_indices = @transform_4, window_bounds = array<i64: 16, 2>}]} {
    %c0 = arith.constant 0 : index
    %c0_0 = arith.constant 0 : index
    %0 = vector.load %arg1[%c0, %c0_0] : memref<16x32xf32, #tpu.memory_space<vmem>>, vector<16x32xf32>
    %c0_1 = arith.constant 0 : index
    %c0_2 = arith.constant 0 : index
    %1 = vector.load %arg2[%c0_1, %c0_2] : memref<32x2xf32, #tpu.memory_space<vmem>>, vector<32x2xf32>
    %cst = arith.constant dense<0.000000e+00> : vector<16x2xf32>
    %2 = tpu.matmul %0, %1, %cst {dimension_numbers = #tpu.dot_dimension_numbers<[1], [0], [0], [1], [0, 0, 1, 1], [], []>} : vector<16x32xf32>, vector<32x2xf32>, vector<16x2xf32> -> vector<16x2xf32>
    %c0_3 = arith.constant 0 : index
    %c0_4 = arith.constant 0 : index
    %3 = vector.load %arg3[%c0_3, %c0_4] : memref<1x2xf32, #tpu.memory_space<vmem>>, vector<1x2xf32>
    %4 = vector.broadcast %3 : vector<1x2xf32> to vector<16x2xf32>
    %5 = arith.addf %2, %4 : vector<16x2xf32>
    %c0_5 = arith.constant 0 : index
    %c0_6 = arith.constant 0 : index
    %6 = vector.load %arg4[%c0_5, %c0_6] : memref<16x1xi32, #tpu.memory_space<vmem>>, vector<16x1xi32>
    %7 = arith.sitofp %6 : vector<16x1xi32> to vector<16x1xf32>
    %8 = arith.negf %5 : vector<16x2xf32>
    %9 = math.exp %8 : vector<16x2xf32>
    %cst_7 = arith.constant 1.000000e+00 : f32
    %10 = vector.broadcast %cst_7 : f32 to vector<16x2xf32>
    %11 = arith.addf %10, %9 : vector<16x2xf32>
    %12 = arith.divf %10, %11 : vector<16x2xf32>
    %13 = vector.broadcast %7 : vector<16x1xf32> to vector<16x2xf32>
    %14 = arith.mulf %12, %13 : vector<16x2xf32>
    %c0_8 = arith.constant 0 : index
    %c0_9 = arith.constant 0 : index
    %15 = vector.load %arg5[%c0_8, %c0_9] : memref<16x2xf32, #tpu.memory_space<vmem>>, vector<16x2xf32>
    tpu.vector_store %arg5[%c0_8, %c0_9], %14 {strides = array<i32>} : memref<16x2xf32, #tpu.memory_space<vmem>>, vector<16x2xf32>,
    return
  }
  func.func @transform_0(%arg0: i32) -> (i32, i32) {
    %c0_i32 = arith.constant 0 : i32
    %c0_i32_0 = arith.constant 0 : i32
    return %arg0, %c0_i32 : i32, i32
  }
  func.func @transform_1(%arg0: i32) -> (i32, i32) {
    %c0_i32 = arith.constant 0 : i32
    %c0_i32_0 = arith.constant 0 : i32
    %c0_i32_1 = arith.constant 0 : i32
    return %c0_i32, %c0_i32_0 : i32, i32
  }
  func.func @transform_2(%arg0: i32) -> (i32, i32) {
    %c0_i32 = arith.constant 0 : i32
    %c0_i32_0 = arith.constant 0 : i32
    %c0_i32_1 = arith.constant 0 : i32
    return %c0_i32, %c0_i32_0 : i32, i32
  }
  func.func @transform_3(%arg0: i32) -> (i32, i32) {
    %c0_i32 = arith.constant 0 : i32
    %c0_i32_0 = arith.constant 0 : i32
    return %arg0, %c0_i32 : i32, i32
  }
  func.func @transform_4(%arg0: i32) -> (i32, i32) {
    %c0_i32 = arith.constant 0 : i32
    %c0_i32_0 = arith.constant 0 : i32
    return %arg0, %c0_i32 : i32, i32
  }
}

</mosaic_0001>

<bundles_post_ra>
// kernel: tpu_custom_call.1
= control target key start
LH: loop header
LB: loop body
LE: loop exit
PB: predicated region body
PF: predicated region fallthrough
CT: control target
= control target key end

     0   :  { %v137_v2 = vmov 0   ;;  %vm27_vm0 = vcmask 261120   ;;  %vm111_vm8 = vcmask 15360   ;;  %s196_s1 = inlined_call_operand.vmem [shape: f32[32,2], index: 1, kind: input, shape index: {}]   ;;  %s197_s3 = inlined_call_operand.vmem [shape: s32[16,1], index: 3, kind: input, shape index: {}]   ;;  %s198_s2 = inlined_call_operand.vmem [shape: f32[1,2], index: 2, kind: input, shape index: {}]   ;;  %s199_s0 = inlined_call_operand.vmem [shape: f32[16,32], index: 0, kind: input, shape index: {}]   ;;  %s200_s4 = inlined_call_operand.vmem [shape: f32[16,2], index: 4, kind: output, shape index: {}]  }
   0x1   :  { %v22_v0 = vld [vmem:[%s196_s1 + $0x18] sm:$0xff]  ;;  %v21_v1 = vld [vmem:[%s196_s1 + $0x10] sm:$0xff]  ;;  %127 = vset.pattern.permute.xlu0 %v137_v2  ;;  %v20_v3 = vld [vmem:[%s196_s1 + $0x8] sm:$0xff] }
   0x2   :  { %46 = vmatpush.msra.mxu0 %v22_v0  ;;  %122 = vmatpush.msra.mxu1 %v22_v0  ;;  %v57_v4 = vld [vmem:[%s197_s3] sm:$0xff]  ;;  %v18_v8 = vld [vmem:[%s199_s0 + $0x8] sm:$0xff] }
   0x3   :  { %v59_v5 = vcvt.s32.f32 %v57_v4  ;;  %v19_v6 = vld [vmem:[%s196_s1] sm:$0xff]  ;;  %v58_v9 = vld [vmem:[%s197_s3 + $0x8] sm:$0xff] }
   0x4   :  { %47 = vmatpush.msra.mxu0 %v21_v1  ;;  %123 = vmatpush.msra.mxu1 %v21_v1  ;;  %v17_v7 = vld [vmem:[%s199_s0] sm:$0xff]  ;;  %v60_v10 = vcvt.s32.f32 %v58_v9 }
   0x5   :  { %101 = vperm.xlu0 %127, %v59_v5   ;;  %v128_v11 = vld [vmem:[%s198_s2] ss:$0 sm:$0xff] }
   0x6   :  { %48 = vmatpush.msra.mxu0 %v20_v3  ;;  %124 = vmatpush.msra.mxu1 %v20_v3 }
   0x8   :  { %49 = vmatpush.msra.mxu0 %v19_v6  ;;  %125 = vmatpush.msra.mxu1 %v19_v6 }
   0x9   :  { %118 = vmatmul.msk.f32.vlgmr.msra.gmra.mxu0 %vm27_vm0, %v17_v7  ;;  %119 = vmatmul.msk.f32.vlgmr.msra.gmra.mxu1 %vm27_vm0, %v18_v8 }
   0xd   :  { %106 = vperm.xlu0 %127, %v60_v10  }
  0x77   :  { %v102_v24 = vpop.permute.xlu0 %101 }
  0x7f   :  { %v107_v43 = vpop.permute.xlu0 %106 }
  0x86   :  { %v51_v12 = vpop.f32.mrf.mxu0  ;;  %v54_v13 = vpop.f32.mrf.mxu1 }
  0x87   :  { %v52_v14 = vadd.f32 %v128_v11, %v51_v12  ;;  %v55_v15 = vadd.f32 %v128_v11, %v54_v13 }
  0x89   :  { %v120_v16 = vmul.f32 -1.442695, %v52_v14  ;;  %v121_v17 = vmul.f32 -1.442695, %v55_v15 }
  0x8b   :  { %129 = vpow2.f32 %v120_v16 }
  0x8c   :  { %131 = vpow2.f32 %v121_v17 }
  0x91   :  { %v130_v18 = vpop.eup %129 }
  0x92   :  { %v132_v19 = vpop.eup %131  ;;  %v67_v20 = vadd.f32 1.0, %v130_v18 }
  0x93   :  { %v68_v21 = vadd.f32 1.0, %v132_v19 }
  0x94   :  { %133 = vrcp.f32 %v67_v20  ;;  %v80_v28 = vand.u32 2147483648, %v67_v20  ;;  %v78_v31 = vand.u32 2147483647, %v67_v20  ;;  %vm74_vm3 = vweird.f32 %v67_v20 }
  0x95   :  { %135 = vrcp.f32 %v68_v21  ;;  %v95_v32 = vand.u32 2147483648, %v68_v21  ;;  %v93_v34 = vand.u32 2147483647, %v68_v21  ;;  %vm89_vm5 = vweird.f32 %v68_v21 }
  0x96   :  { %v81_v36 = vor.u32 1.1754944e-38, %v80_v28  ;;  %vm79_vm6 = vcmp.eq.f32.partialorder %v78_v31, 8.507059e+37 }
  0x97   :  { %v96_v39 = vor.u32 1.1754944e-38, %v95_v32  ;;  %vm94_vm9 = vcmp.eq.f32.partialorder %v93_v34, 8.507059e+37 }
  0x9a   :  { %v134_v22 = vpop.eup %133 }
  0x9b   :  { %v136_v23 = vpop.eup %135  ;;  %v70_v25 = vmul.f32 %v134_v22, %v67_v20  ;;  %vm75_vm1 = vweird.f32 %v134_v22 }
  0x9c   :  { %v85_v26 = vmul.f32 %v136_v23, %v68_v21  ;;  %vm90_vm2 = vweird.f32 %v136_v23  ;;  %vm76_vm4 = vmor %vm74_vm3, %vm75_vm1 }
  0x9d   :  { %v71_v27 = vsub.f32 1.0, %v70_v25  ;;  %vm91_vm7 = vmor %vm89_vm5, %vm90_vm2 }
  0x9e   :  { %v86_v29 = vsub.f32 1.0, %v85_v26 }
  0x9f   :  { %v72_v30 = vmul.f32 %v134_v22, %v71_v27 }
  0xa0   :  { %v87_v33 = vmul.f32 %v136_v23, %v86_v29 }
  0xa1   :  { %v73_v35 = vadd.f32 %v134_v22, %v72_v30 }
  0xa2   :  { %v88_v37 = vadd.f32 %v136_v23, %v87_v33 }
  0xa3   :  { %v77_v38 = vsel %vm76_vm4, %v134_v22, %v73_v35 }
  0xa4   :  { %v82_v40 = vsel %vm79_vm6, %v81_v36, %v77_v38  ;;  %v92_v41 = vsel %vm91_vm7, %v136_v23, %v88_v37 }
  0xa5   :  { %v109_v42 = vmul.f32 %v102_v24, %v82_v40  ;;  %v97_v44 = vsel %vm94_vm9, %v96_v39, %v92_v41 }
  0xa6   :  { %v110_v45 = vmul.f32 %v107_v43, %v97_v44 }
  0xa7   :  { %112 = vst.msk [vmem:[%s200_s4] sm:$0xff] %vm111_vm8, %v109_v42 }
  0xa8   :  { %113 = vst.msk [vmem:[%s200_s4 + $0x8] sm:$0xff] %vm111_vm8, %v110_v45 }

</bundles_post_ra>
